<compile_context>
chip_gen: v7x
topology: tpu7x:2x2x1
jax: 0.10.0
libtpu: 0.0.40
codegen_flags: <defaults>
</compile_context>

<pallas_src>
import math
import functools

import jax
import jax.numpy as jnp
from jax.experimental import pallas as pl
from jax.experimental.pallas import tpu as pltpu

# Large finite negative for masked scores: NaN-safe even if a row's first
# visited kv block were fully masked (unlike -inf).
_MASK_VALUE = -1e30


def _round_up(n: int, m: int) -> int:
    return ((n + m - 1) // m) * m


def _pick_tile(n: int, target: int, multiple: int) -> int:
    """Largest multiple of `multiple` dividing `n` that is <= target; falls
    back to the full dimension (always legal for a BlockSpec)."""
    cands = [t for t in range(multiple, min(target, n) + 1, multiple)
             if n % t == 0]
    return max(cands) if cands else n


def _default_attn_block_size() -> int:
    """256 on the 256-wide-MXU generations (v6e / v7x), 128 otherwise."""
    try:
        kind = jax.devices()[0].device_kind.lower()
    except Exception:
        return 128
    if any(tag in kind for tag in ("v6", "v7", "7x")):
        return 256
    return 128


def _default_vmem_limit_bytes() -> int:
    """Explicit scoped-VMEM budget: ~75% of physical capacity, clamped."""
    cap = None
    try:
        cap = pltpu.get_tpu_info().vmem_capacity_bytes
    except Exception:
        cap = None
    if not cap:
        cap = 64 * 1024 * 1024  # conservative (v7x physical size)
    return int(max(32 * 1024 * 1024, min(cap * 3 // 4, 100 * 1024 * 1024)))


# --------------------------------------------------------------------------
# Kernel 1: QKV projection.  Grid = (col_tiles, row_tiles): the row axis is
# innermost, so the weight / bias blocks (index_map constant in the inner
# loop) stay VMEM-resident while x row tiles stream past them.
# --------------------------------------------------------------------------
def _qkv_proj_kernel(x_ref, wq_ref, wk_ref, wv_ref, bq_ref, bk_ref, bv_ref,
                     q_ref, k_ref, v_ref):
    x = x_ref[...]                                              # (rows, C)
    q_ref[...] = (jnp.dot(x, wq_ref[...], preferred_element_type=jnp.float32)
                  + bq_ref[...]).astype(q_ref.dtype)
    k_ref[...] = (jnp.dot(x, wk_ref[...], preferred_element_type=jnp.float32)
                  + bk_ref[...]).astype(k_ref.dtype)
    v_ref[...] = (jnp.dot(x, wv_ref[...], preferred_element_type=jnp.float32)
                  + bv_ref[...]).astype(v_ref.dtype)


# --------------------------------------------------------------------------
# Kernel 2: flash attention (online softmax) over a triangular kv grid.
# Scalar-prefetched qi/ki tables enumerate only causally-needed kv blocks.
# --------------------------------------------------------------------------
def _flash_attn_kernel(qi_ref, ki_ref, q_ref, k_ref, v_ref, o_ref,
                       m_scr, l_scr, acc_scr, *, n_head: int, bq: int, bk: int):
    C = q_ref.shape[2]
    hd = C // n_head

    s_idx = pl.program_id(1)
    qi = qi_ref[s_idx]
    ki = ki_ref[s_idx]

    q_start = qi * bq
    q_last = q_start + (bq - 1)        # inclusive last query row
    kv_start = ki * bk
    kv_last = kv_start + (bk - 1)      # inclusive last key col

    # Reset per-(batch, q-tile) online-softmax state at the first KV block.
    @pl.when(ki == 0)
    def _init():
        m_scr[...] = jnp.full(m_scr.shape, -jnp.inf, dtype=jnp.float32)
        l_scr[...] = jnp.zeros(l_scr.shape, dtype=jnp.float32)
        acc_scr[...] = jnp.zeros(acc_scr.shape, dtype=jnp.float32)

    def _update(mask):
        q = q_ref[0]                                            # (bq, C)
        k = k_ref[0]                                            # (bk, C)
        v = v_ref[0]                                            # (bk, C)
        # TODO(synk): for large n_head (>=16) batch heads via a leading
        # dot_general batch dim / head-major layout instead of unrolling.
        for h in range(n_head):
            sl = slice(h * hd, (h + 1) * hd)
            # q already carries 1/sqrt(hd) (folded into W_q).  Contract the
            # last dims directly -> no k transpose.
            s = jax.lax.dot_general(
                q[:, sl], k[:, sl], (((1,), (1,)), ((), ())),
                preferred_element_type=jnp.float32)             # (bq, bk)
            if mask is not None:
                s = jnp.where(mask, s, _MASK_VALUE)
            m_prev = m_scr[h]                                   # (bq, 1)
            m_new = jnp.maximum(m_prev, jnp.max(s, axis=-1, keepdims=True))
            alpha = jnp.exp(m_prev - m_new)                     # (bq, 1)
            p = jnp.exp(s - m_new)                              # (bq, bk)
            l_scr[h] = alpha * l_scr[h] + jnp.sum(p, axis=-1, keepdims=True)
            acc_scr[h] = alpha * acc_scr[h] + jnp.dot(
                p.astype(v.dtype), v[:, sl],
                preferred_element_type=jnp.float32)             # (bq, hd)
            m_scr[h] = m_new

    # Fully-below-diagonal kv block: every entry valid, no mask work.
    @pl.when(kv_last <= q_start)
    def _full_block():
        _update(None)

    # Diagonal-straddling kv block: build the iota mask only here.  (The
    # triangular grid never emits blocks entirely above the diagonal.)
    @pl.when(kv_last > q_start)
    def _diag_block():
        rows = q_start + jax.lax.broadcasted_iota(jnp.int32, (bq, bk), 0)
        cols = kv_start + jax.lax.broadcasted_iota(jnp.int32, (bq, bk), 1)
        _update(rows >= cols)

    # Finalize on the last kv block of this q tile: normalize each head
    # (deferred 1/l, EUP approx reciprocal) and emit a lane-dense (bq, C)
    # tile; the output projection is a separate full-K matmul kernel.
    @pl.when(ki == q_last // bk)
    def _finalize():
        parts = []
        for h in range(n_head):
            inv_l = pl.reciprocal(l_scr[h], approx=True)        # (bq, 1)
            parts.append(acc_scr[h] * inv_l)                    # (bq, hd) f32
        y = parts[0] if n_head == 1 else jnp.concatenate(parts, axis=-1)
        o_ref[0] = y.astype(o_ref.dtype)


# --------------------------------------------------------------------------
# Kernel 3: output projection (full-K matmul), same weight-resident grid
# order as kernel 1.
# --------------------------------------------------------------------------
def _out_proj_kernel(y_ref, w_ref, b_ref, o_ref):
    o_ref[...] = (jnp.dot(y_ref[...], w_ref[...],
                          preferred_element_type=jnp.float32)
                  + b_ref[...]).astype(o_ref.dtype)


# --------------------------------------------------------------------------
# Wrapper
# --------------------------------------------------------------------------
def causal_self_attention(x, w_attn, b_attn, w_proj, b_proj, *, n_head: int,
                          block_q=None, block_k=None,
                          compute_dtype=jnp.bfloat16, vmem_limit_bytes=None):
    """GPT causal self-attention.  Weights are (in, out) = torch weight.T.

    compute_dtype: MXU-input dtype (bf16 by default); accumulation and the
    softmax statistics always stay f32 inside the kernels.  Output keeps the
    input dtype.
    """
    B, T, C = x.shape
    assert C % n_head == 0
    hd = C // n_head
    scale = 1.0 / math.sqrt(hd)

    out_dtype = x.dtype
    dt = out_dtype if compute_dtype is None else compute_dtype
    if vmem_limit_bytes is None:
        vmem_limit_bytes = _default_vmem_limit_bytes()

    # ----- generation-aware attention block sizes, padded/clamped to T ------
    default_blk = _default_attn_block_size()

    def _blk(req):
        blk = default_blk if req is None else int(req)
        blk = min(blk, _round_up(T, 8))
        return max(8, _round_up(blk, 8))

    bq = _blk(block_q)
    bk = _blk(block_k)
    Tp = _round_up(T, math.lcm(bq, bk))      # pad T so blocks divide evenly

    # Split the fused QKV weight and fold the attention scale into the Q
    # projection (host-side, once) so the kernels never scale scores.
    w_q = (w_attn[:, :C] * scale).astype(dt)
    w_k = w_attn[:, C:2 * C].astype(dt)
    w_v = w_attn[:, 2 * C:].astype(dt)
    b_q = (b_attn[:, :C] * scale).astype(dt)
    b_k = b_attn[:, C:2 * C].astype(dt)
    b_v = b_attn[:, 2 * C:].astype(dt)
    w_p = w_proj.astype(dt)
    b_p = b_proj.astype(dt)

    xp = x.astype(dt)
    if Tp != T:
        xp = jnp.pad(xp, ((0, 0), (0, Tp - T), (0, 0)))

    BT = B * Tp
    row_tile = _pick_tile(BT, 512, 8)        # sublane-dense row tiles
    col_tile = _pick_tile(C, 512, 128)       # lane-dense column tiles
    x2 = xp.reshape(BT, C)

    compiler_params_2d = pltpu.CompilerParams(
        dimension_semantics=("parallel", "parallel"),
        vmem_limit_bytes=vmem_limit_bytes)

    # ---------------- kernel 1: QKV projection (weights resident) ----------
    q2, k2, v2 = pl.pallas_call(
        _qkv_proj_kernel,
        out_shape=[jax.ShapeDtypeStruct((BT, C), dt)] * 3,
        grid_spec=pltpu.PrefetchScalarGridSpec(
            num_scalar_prefetch=0,
            # col axis OUTER, row axis INNER: weight/bias index maps are
            # constant across the inner loop -> streamed from HBM once.
            grid=(C // col_tile, BT // row_tile),
            in_specs=[
                pl.BlockSpec((row_tile, C), lambda j, i: (i, 0)),   # x
                pl.BlockSpec((C, col_tile), lambda j, i: (0, j)),   # w_q
                pl.BlockSpec((C, col_tile), lambda j, i: (0, j)),   # w_k
                pl.BlockSpec((C, col_tile), lambda j, i: (0, j)),   # w_v
                pl.BlockSpec((1, col_tile), lambda j, i: (0, j)),   # b_q
                pl.BlockSpec((1, col_tile), lambda j, i: (0, j)),   # b_k
                pl.BlockSpec((1, col_tile), lambda j, i: (0, j)),   # b_v
            ],
            out_specs=[pl.BlockSpec((row_tile, col_tile),
                                    lambda j, i: (i, j))] * 3,
        ),
        compiler_params=compiler_params_2d,
    )(x2, w_q, w_k, w_v, b_q, b_k, b_v)

    q = q2.reshape(B, Tp, C)
    k = k2.reshape(B, Tp, C)
    v = v2.reshape(B, Tp, C)

    # ---------------- kernel 2: flash attention (triangular kv grid) -------
    q_tiles = Tp // bq
    qi_list, ki_list = [], []
    for qi in range(q_tiles):
        last_ki = ((qi + 1) * bq - 1) // bk
        for ki in range(last_ki + 1):
            qi_list.append(qi)
            ki_list.append(ki)
    qi_tab = jnp.asarray(qi_list, dtype=jnp.int32)
    ki_tab = jnp.asarray(ki_list, dtype=jnp.int32)
    n_steps = len(qi_list)

    flash = functools.partial(_flash_attn_kernel, n_head=n_head, bq=bq, bk=bk)
    y = pl.pallas_call(
        flash,
        out_shape=jax.ShapeDtypeStruct((B, Tp, C), dt),
        grid_spec=pltpu.PrefetchScalarGridSpec(
            num_scalar_prefetch=2,
            grid=(B, n_steps),
            in_specs=[
                pl.BlockSpec((1, bq, C), lambda b, s, qt, kt: (b, qt[s], 0)),
                pl.BlockSpec((1, bk, C), lambda b, s, qt, kt: (b, kt[s], 0)),
                pl.BlockSpec((1, bk, C), lambda b, s, qt, kt: (b, kt[s], 0)),
            ],
            out_specs=pl.BlockSpec((1, bq, C), lambda b, s, qt, kt: (b, qt[s], 0)),
            scratch_shapes=[
                pltpu.VMEM((n_head, bq, 1), jnp.float32),    # running max m
                pltpu.VMEM((n_head, bq, 1), jnp.float32),    # running sum l
                pltpu.VMEM((n_head, bq, hd), jnp.float32),   # unnormalized acc
            ],
        ),
        compiler_params=pltpu.CompilerParams(
            # TODO(synk): consider CORE_PARALLEL on the batch axis for v7x.
            dimension_semantics=("parallel", "arbitrary"),
            vmem_limit_bytes=vmem_limit_bytes),
    )(qi_tab, ki_tab, q, k, v)

    # ---------------- kernel 3: output projection (full-K matmul) ----------
    y2 = y.reshape(BT, C)
    out2 = pl.pallas_call(
        _out_proj_kernel,
        out_shape=jax.ShapeDtypeStruct((BT, C), out_dtype),
        grid_spec=pltpu.PrefetchScalarGridSpec(
            num_scalar_prefetch=0,
            grid=(C // col_tile, BT // row_tile),
            in_specs=[
                pl.BlockSpec((row_tile, C), lambda j, i: (i, 0)),   # y
                pl.BlockSpec((C, col_tile), lambda j, i: (0, j)),   # w_proj
                pl.BlockSpec((1, col_tile), lambda j, i: (0, j)),   # b_proj
            ],
            out_specs=pl.BlockSpec((row_tile, col_tile), lambda j, i: (i, j)),
        ),
        compiler_params=compiler_params_2d,
    )(y2, w_p, b_p)

    out = out2.reshape(B, Tp, C)
    if Tp != T:
        out = out[:, :T, :]
    return out


# --------------------------------------------------------------------------
# Pure-JAX reference mirroring the PyTorch forward pass.
# --------------------------------------------------------------------------
def _reference(x, w_attn, b_attn, w_proj, b_proj, n_head):
    B, T, C = x.shape
    hd = C // n_head
    qkv = x @ w_attn + b_attn[0]
    q, k, v = qkv[..., :C], qkv[..., C:2 * C], qkv[..., 2 * C:]
    q = q.reshape(B, T, n_head, hd).transpose(0, 2, 1, 3)
    k = k.reshape(B, T, n_head, hd).transpose(0, 2, 1, 3)
    v = v.reshape(B, T, n_head, hd).transpose(0, 2, 1, 3)
    att = jnp.einsum("bhqd,bhkd->bhqk", q, k) / math.sqrt(hd)
    mask = jnp.tril(jnp.ones((T, T), dtype=bool))
    att = jnp.where(mask[None, None], att, -jnp.inf)
    att = jax.nn.softmax(att, axis=-1)
    y = jnp.einsum("bhqk,bhkd->bhqd", att, v)
    y = y.transpose(0, 2, 1, 3).reshape(B, T, C)
    return y @ w_proj + b_proj[0]


if __name__ == "__main__":
    # Small config: n_embd=32, n_head=4, T=32 so that the triangular flash
    # tiling (2 q-tiles, 3 kv steps) and both mask branches are exercised.
    B, T, C, n_head = 2, 32, 32, 4

    key = jax.random.PRNGKey(0)
    kx, kwa, kba, kwp, kbp = jax.random.split(key, 5)
    x = jax.random.normal(kx, (B, T, C), dtype=jnp.float32)
    # Weights stored as (in, out) == PyTorch Linear weight transposed.
    w_attn = jax.random.normal(kwa, (C, 3 * C), dtype=jnp.float32) * 0.02
    b_attn = jax.random.normal(kba, (1, 3 * C), dtype=jnp.float32) * 0.02
    w_proj = jax.random.normal(kwp, (C, C), dtype=jnp.float32) * 0.02
    b_proj = jax.random.normal(kbp, (1, C), dtype=jnp.float32) * 0.02

    ref = _reference(x, w_attn, b_attn, w_proj, b_proj, n_head)

    # 1) f32 compute, small blocks -> multi-tile triangular grid + both mask
    #    branches (tolerance absorbs the EUP approx reciprocal).
    out = causal_self_attention(x, w_attn, b_attn, w_proj, b_proj,
                                n_head=n_head, block_q=16, block_k=16,
                                compute_dtype=jnp.float32)
    out = jax.block_until_ready(out)
    assert out.shape == (B, T, C)
    assert jnp.allclose(out, ref, atol=5e-4, rtol=2e-2), "f32 mismatch vs reference"

    # 2) default path: bf16 MXU inputs (f32 accumulation / softmax stats),
    #    auto-chosen block sizes and VMEM limit.
    out_bf16 = causal_self_attention(x, w_attn, b_attn, w_proj, b_proj,
                                     n_head=n_head)
    out_bf16 = jax.block_until_ready(out_bf16).astype(jnp.float32)
    assert jnp.allclose(out_bf16, ref, atol=5e-3, rtol=1e-1), "bf16 mismatch vs reference"

    # 3) T not divisible by the block size exercises the pad-to-block + slice path.
    T3 = 24
    x3 = x[:, :T3, :]
    ref3 = _reference(x3, w_attn, b_attn, w_proj, b_proj, n_head)
    out3 = causal_self_attention(x3, w_attn, b_attn, w_proj, b_proj,
                                 n_head=n_head, block_q=16, block_k=16,
                                 compute_dtype=jnp.float32)
    out3 = jax.block_until_ready(out3)
    assert out3.shape == (B, T3, C)
    assert jnp.allclose(out3, ref3, atol=5e-4, rtol=2e-2), "padded-T mismatch vs reference"

    print("KERNEL_OK")
</pallas_src>

<mosaic_0001>
module attributes {stable_mosaic.version = 11 : i64} {
  func.func @_qkv_proj_kernel(%arg0: i32, %arg1: i32, %arg2: memref<64x32xf32, #tpu.memory_space<vmem>>, %arg3: memref<32x32xf32, #tpu.memory_space<vmem>>, %arg4: memref<32x32xf32, #tpu.memory_space<vmem>>, %arg5: memref<32x32xf32, #tpu.memory_space<vmem>>, %arg6: memref<1x32xf32, #tpu.memory_space<vmem>>, %arg7: memref<1x32xf32, #tpu.memory_space<vmem>>, %arg8: memref<1x32xf32, #tpu.memory_space<vmem>>, %arg9: memref<64x32xf32, #tpu.memory_space<vmem>>, %arg10: memref<64x32xf32, #tpu.memory_space<vmem>>, %arg11: memref<64x32xf32, #tpu.memory_space<vmem>>) attributes {dimension_semantics = [#tpu.dimension_semantics<parallel>, #tpu.dimension_semantics<parallel>], iteration_bounds = array<i64: 1, 1>, scalar_prefetch = 0 : i64, scratch_operands = 0 : i64, tpu.core_type = #tpu.core_type<tc>, window_params = [{transform_indices = @transform_0, window_bounds = array<i64: 64, 32>}, {transform_indices = @transform_1, window_bounds = array<i64: 32, 32>}, {transform_indices = @transform_2, window_bounds = array<i64: 32, 32>}, {transform_indices = @transform_3, window_bounds = array<i64: 32, 32>}, {transform_indices = @transform_4, window_bounds = array<i64: 1, 32>}, {transform_indices = @transform_5, window_bounds = array<i64: 1, 32>}, {transform_indices = @transform_6, window_bounds = array<i64: 1, 32>}, {transform_indices = @transform_7, window_bounds = array<i64: 64, 32>}, {transform_indices = @transform_8, window_bounds = array<i64: 64, 32>}, {transform_indices = @transform_9, window_bounds = array<i64: 64, 32>}]} {
    %c0 = arith.constant 0 : index
    %c0_0 = arith.constant 0 : index
    %0 = vector.load %arg2[%c0, %c0_0] : memref<64x32xf32, #tpu.memory_space<vmem>>, vector<64x32xf32>
    %c0_1 = arith.constant 0 : index
    %c0_2 = arith.constant 0 : index
    %1 = vector.load %arg3[%c0_1, %c0_2] : memref<32x32xf32, #tpu.memory_space<vmem>>, vector<32x32xf32>
    %cst = arith.constant dense<0.000000e+00> : vector<64x32xf32>
    %2 = tpu.matmul %0, %1, %cst {dimension_numbers = #tpu.dot_dimension_numbers<[1], [0], [0], [1], [0, 0, 1, 1], [], []>} : vector<64x32xf32>, vector<32x32xf32>, vector<64x32xf32> -> vector<64x32xf32>
    %c0_3 = arith.constant 0 : index
    %c0_4 = arith.constant 0 : index
    %3 = vector.load %arg6[%c0_3, %c0_4] : memref<1x32xf32, #tpu.memory_space<vmem>>, vector<1x32xf32>
    %4 = vector.broadcast %3 : vector<1x32xf32> to vector<64x32xf32>
    %5 = arith.addf %2, %4 : vector<64x32xf32>
    %c0_5 = arith.constant 0 : index
    %c0_6 = arith.constant 0 : index
    %6 = vector.load %arg9[%c0_5, %c0_6] : memref<64x32xf32, #tpu.memory_space<vmem>>, vector<64x32xf32>
    tpu.vector_store %arg9[%c0_5, %c0_6], %5 {strides = array<i32>} : memref<64x32xf32, #tpu.memory_space<vmem>>, vector<64x32xf32>,
    %c0_7 = arith.constant 0 : index
    %c0_8 = arith.constant 0 : index
    %7 = vector.load %arg4[%c0_7, %c0_8] : memref<32x32xf32, #tpu.memory_space<vmem>>, vector<32x32xf32>
    %cst_9 = arith.constant dense<0.000000e+00> : vector<64x32xf32>
    %8 = tpu.matmul %0, %7, %cst_9 {dimension_numbers = #tpu.dot_dimension_numbers<[1], [0], [0], [1], [0, 0, 1, 1], [], []>} : vector<64x32xf32>, vector<32x32xf32>, vector<64x32xf32> -> vector<64x32xf32>
    %c0_10 = arith.constant 0 : index
    %c0_11 = arith.constant 0 : index
    %9 = vector.load %arg7[%c0_10, %c0_11] : memref<1x32xf32, #tpu.memory_space<vmem>>, vector<1x32xf32>
    %10 = vector.broadcast %9 : vector<1x32xf32> to vector<64x32xf32>
    %11 = arith.addf %8, %10 : vector<64x32xf32>
    %c0_12 = arith.constant 0 : index
    %c0_13 = arith.constant 0 : index
    %12 = vector.load %arg10[%c0_12, %c0_13] : memref<64x32xf32, #tpu.memory_space<vmem>>, vector<64x32xf32>
    tpu.vector_store %arg10[%c0_12, %c0_13], %11 {strides = array<i32>} : memref<64x32xf32, #tpu.memory_space<vmem>>, vector<64x32xf32>,
    %c0_14 = arith.constant 0 : index
    %c0_15 = arith.constant 0 : index
    %13 = vector.load %arg5[%c0_14, %c0_15] : memref<32x32xf32, #tpu.memory_space<vmem>>, vector<32x32xf32>
    %cst_16 = arith.constant dense<0.000000e+00> : vector<64x32xf32>
    %14 = tpu.matmul %0, %13, %cst_16 {dimension_numbers = #tpu.dot_dimension_numbers<[1], [0], [0], [1], [0, 0, 1, 1], [], []>} : vector<64x32xf32>, vector<32x32xf32>, vector<64x32xf32> -> vector<64x32xf32>
    %c0_17 = arith.constant 0 : index
    %c0_18 = arith.constant 0 : index
    %15 = vector.load %arg8[%c0_17, %c0_18] : memref<1x32xf32, #tpu.memory_space<vmem>>, vector<1x32xf32>
    %16 = vector.broadcast %15 : vector<1x32xf32> to vector<64x32xf32>
    %17 = arith.addf %14, %16 : vector<64x32xf32>
    %c0_19 = arith.constant 0 : index
    %c0_20 = arith.constant 0 : index
    %18 = vector.load %arg11[%c0_19, %c0_20] : memref<64x32xf32, #tpu.memory_space<vmem>>, vector<64x32xf32>
    tpu.vector_store %arg11[%c0_19, %c0_20], %17 {strides = array<i32>} : memref<64x32xf32, #tpu.memory_space<vmem>>, vector<64x32xf32>,
    return
  }
  func.func @transform_0(%arg0: i32, %arg1: i32) -> (i32, i32) {
    %c0_i32 = arith.constant 0 : i32
    %c0_i32_0 = arith.constant 0 : i32
    return %arg1, %c0_i32 : i32, i32
  }
  func.func @transform_1(%arg0: i32, %arg1: i32) -> (i32, i32) {
    %c0_i32 = arith.constant 0 : i32
    %c0_i32_0 = arith.constant 0 : i32
    return %c0_i32, %arg0 : i32, i32
  }
  func.func @transform_2(%arg0: i32, %arg1: i32) -> (i32, i32) {
    %c0_i32 = arith.constant 0 : i32
    %c0_i32_0 = arith.constant 0 : i32
    return %c0_i32, %arg0 : i32, i32
  }
  func.func @transform_3(%arg0: i32, %arg1: i32) -> (i32, i32) {
    %c0_i32 = arith.constant 0 : i32
    %c0_i32_0 = arith.constant 0 : i32
    return %c0_i32, %arg0 : i32, i32
  }
  func.func @transform_4(%arg0: i32, %arg1: i32) -> (i32, i32) {
    %c0_i32 = arith.constant 0 : i32
    %c0_i32_0 = arith.constant 0 : i32
    return %c0_i32, %arg0 : i32, i32
  }
  func.func @transform_5(%arg0: i32, %arg1: i32) -> (i32, i32) {
    %c0_i32 = arith.constant 0 : i32
    %c0_i32_0 = arith.constant 0 : i32
    return %c0_i32, %arg0 : i32, i32
  }
  func.func @transform_6(%arg0: i32, %arg1: i32) -> (i32, i32) {
    %c0_i32 = arith.constant 0 : i32
    %c0_i32_0 = arith.constant 0 : i32
    return %c0_i32, %arg0 : i32, i32
  }
  func.func @transform_7(%arg0: i32, %arg1: i32) -> (i32, i32) {
    %c0_i32 = arith.constant 0 : i32
    return %arg1, %arg0 : i32, i32
  }
  func.func @transform_8(%arg0: i32, %arg1: i32) -> (i32, i32) {
    %c0_i32 = arith.constant 0 : i32
    return %arg1, %arg0 : i32, i32
  }
  func.func @transform_9(%arg0: i32, %arg1: i32) -> (i32, i32) {
    %c0_i32 = arith.constant 0 : i32
    return %arg1, %arg0 : i32, i32
  }
}

</mosaic_0001>

<bundles_post_ra>
// kernel: tpu_custom_call.1
= control target key start
LH: loop header
LB: loop body
LE: loop exit
PB: predicated region body
PF: predicated region fallthrough
CT: control target
= control target key end

     0   :  { %vm48_vm0 = vcmask 261120   ;;  %s836_s1 = inlined_call_operand.vmem [shape: f32[32,32], index: 1, kind: input, shape index: {}]   ;;  %s837_s0 = inlined_call_operand.vmem [shape: f32[64,32], index: 0, kind: input, shape index: {}]   ;;  %s838_s2 = inlined_call_operand.vmem [shape: f32[32,32], index: 2, kind: input, shape index: {}]   ;;  %s839_s3 = inlined_call_operand.vmem [shape: f32[32,32], index: 3, kind: input, shape index: {}]   ;;  %s840_s4 = inlined_call_operand.vmem [shape: f32[1,32], index: 4, kind: input, shape index: {}]   ;;  %s841_s7 = inlined_call_operand.vmem [shape: f32[64,32], index: 7, kind: output, shape index: {0}]   ;;  %s842_s5 = inlined_call_operand.vmem [shape: f32[1,32], index: 5, kind: input, shape index: {}]   ;;  %s843_s6 = inlined_call_operand.vmem [shape: f32[1,32], index: 6, kind: input, shape index: {}]   ;;  %s844_s8 = inlined_call_operand.vmem [shape: f32[64,32], index: 8, kind: output, shape index: {1}]   ;;  %s845_s9 = inlined_call_operand.vmem [shape: f32[64,32], index: 9, kind: output, shape index: {2}]  }
   0x1   :  { %v37_v0 = vld [vmem:[%s836_s1] sm:$0xff]  ;;  %v38_v1 = vld [vmem:[%s836_s1 + $0x8] sm:$0xff]  ;;  %v39_v2 = vld [vmem:[%s836_s1 + $0x10] sm:$0xff] }
   0x2   :  { %v569_v3 = vpack.c.bf16 %v38_v1, %v37_v0  ;;  %v40_v4 = vld [vmem:[%s836_s1 + $0x18] sm:$0xff]  ;;  %v29_v5 = vld [vmem:[%s837_s0] sm:$0xff]  ;;  %v187_v9 = vld [vmem:[%s838_s2 + $0x8] sm:$0xff] }
   0x3   :  { %v33_v6 = vld [vmem:[%s837_s0 + $0x20] sm:$0xff]  ;;  %v573_v7 = vpack.c.bf16 %v40_v4, %v39_v2  ;;  %517 = vmatprep.mubr.msk.f32.mxu0 %vm48_vm0, %v29_v5  ;;  %v311_v11 = vld [vmem:[%s839_s3 + $0x8] sm:$0xff]  ;;  %v188_v14 = vld [vmem:[%s838_s2 + $0x10] sm:$0xff] }
   0x4   :  { %523 = vmatprep.mubr.msk.f32.mxu1 %vm48_vm0, %v33_v6  ;;  %v186_v8 = vld [vmem:[%s838_s2] sm:$0xff]  ;;  %570 = vmatprep.subr.bf16.mxu0 %v569_v3  ;;  %v189_v15 = vld [vmem:[%s838_s2 + $0x18] sm:$0xff]  ;;  %v312_v16 = vld [vmem:[%s839_s3 + $0x10] sm:$0xff] }
   0x5   :  { %593 = vmatprep.subr.bf16.mxu1 %v569_v3  ;;  %v310_v10 = vld [vmem:[%s839_s3] sm:$0xff]  ;;  %572 = vmatpush3.bf16.msra.mxu0 %v569_v3  ;;  %v577_v12 = vpack.c.bf16 %v187_v9, %v186_v8  ;;  %v313_v17 = vld [vmem:[%s839_s3 + $0x18] sm:$0xff]  ;;  %v30_v18 = vld [vmem:[%s837_s0 + $0x8] sm:$0xff]  ;;  %v581_v22 = vpack.c.bf16 %v189_v15, %v188_v14 }
   0x6   :  { %595 = vmatpush3.bf16.msra.mxu1 %v569_v3  ;;  %574 = vmatprep.subr.bf16.mxu0 %v573_v7  ;;  %v585_v13 = vpack.c.bf16 %v311_v11, %v310_v10  ;;  %v34_v19 = vld [vmem:[%s837_s0 + $0x28] sm:$0xff]  ;;  %v31_v20 = vld [vmem:[%s837_s0 + $0x10] sm:$0xff]  ;;  %v589_v23 = vpack.c.bf16 %v313_v17, %v312_v16  ;;  %v32_v24 = vld [vmem:[%s837_s0 + $0x18] sm:$0xff] }
   0x7   :  { %594 = vmatprep.subr.bf16.mxu1 %v573_v7  ;;  %v35_v21 = vld [vmem:[%s837_s0 + $0x30] sm:$0xff]  ;;  %v36_v25 = vld [vmem:[%s837_s0 + $0x38] sm:$0xff]  ;;  %v446_v26 = vld [vmem:[%s840_s4] ss:$0 sm:$0xff] }
   0x8   :  { %v455_v43 = vld [vmem:[%s842_s5] ss:$0 sm:$0xff] }
   0x9   :  { %576 = vmatpush3.bf16.msra.mxu0 %v573_v7  ;;  %v464_v44 = vld [vmem:[%s843_s6] ss:$0 sm:$0xff] }
   0xa   :  { %596 = vmatpush3.bf16.msra.mxu1 %v573_v7  ;;  %586 = vmatprep.subr.bf16.mxu0 %v585_v13 }
   0xb   :  { %578 = vmatprep.subr.bf16.mxu1 %v577_v12 }
   0xc   :  { %518 = vmatmul.mubr.msk.f32.vlgmr.msra.gmra.mrb[0].mxu0 %vm48_vm0, %v30_v18 }
   0xd   :  { %524 = vmatmul.mubr.msk.f32.vlgmr.msra.gmra.mrb[0].mxu1 %vm48_vm0, %v34_v19  ;;  %588 = vmatpush3.bf16.msra.mxu0 %v585_v13 }
   0xe   :  { %580 = vmatpush3.bf16.msra.mxu1 %v577_v12  ;;  %520 = vmatprep.mubr.msk.f32.mxu0 %vm48_vm0, %v31_v20 }
   0xf   :  { %526 = vmatprep.mubr.msk.f32.mxu1 %vm48_vm0, %v35_v21  ;;  %582 = vmatprep.subr.bf16.mxu1 %v581_v22 }
  0x10   :  { %590 = vmatprep.subr.bf16.mxu0 %v589_v23  ;;  %521 = vmatmul.mubr.msk.f32.gmra.mrb[2].mxu0 %vm48_vm0, %v32_v24 }
  0x11   :  { %527 = vmatmul.mubr.msk.f32.gmra.mrb[2].mxu1 %vm48_vm0, %v36_v25  ;;  %592 = vmatpush3.bf16.msra.mxu0 %v589_v23 }
  0x12   :  { %584 = vmatpush3.bf16.msra.mxu1 %v581_v22  ;;  %537 = vmatprep.mubr.msk.f32.mxu1 %vm48_vm0, %v29_v5 }
  0x13   :  { %557 = vmatprep.mubr.msk.f32.mxu0 %vm48_vm0, %v29_v5 }
  0x14   :  { %558 = vmatmul.mubr.msk.f32.vlgmr.msra.gmra.mrb[4].mxu0 %vm48_vm0, %v30_v18 }
  0x15   :  { %538 = vmatmul.mubr.msk.f32.vlgmr.msra.gmra.mrb[4].mxu1 %vm48_vm0, %v30_v18  ;;  %560 = vmatprep.mubr.msk.f32.mxu0 %vm48_vm0, %v31_v20 }
  0x16   :  { %540 = vmatprep.mubr.msk.f32.mxu1 %vm48_vm0, %v31_v20 }
  0x18   :  { %561 = vmatmul.mubr.msk.f32.gmra.mrb[6].mxu0 %vm48_vm0, %v32_v24 }
  0x19   :  { %541 = vmatmul.mubr.msk.f32.gmra.mrb[6].mxu1 %vm48_vm0, %v32_v24  ;;  %563 = vmatprep.mubr.msk.f32.mxu0 %vm48_vm0, %v33_v6 }
  0x1a   :  { %543 = vmatprep.mubr.msk.f32.mxu1 %vm48_vm0, %v33_v6 }
  0x1c   :  { %564 = vmatmul.mubr.msk.f32.gmra.mrb[8].mxu0 %vm48_vm0, %v34_v19 }
  0x1d   :  { %544 = vmatmul.mubr.msk.f32.gmra.mrb[8].mxu1 %vm48_vm0, %v34_v19  ;;  %566 = vmatprep.mubr.msk.f32.mxu0 %vm48_vm0, %v35_v21 }
  0x1e   :  { %546 = vmatprep.mubr.msk.f32.mxu1 %vm48_vm0, %v35_v21 }
  0x20   :  { %567 = vmatmul.mubr.msk.f32.gmra.mrb[10].mxu0 %vm48_vm0, %v36_v25 }
  0x21   :  { %547 = vmatmul.mubr.msk.f32.gmra.mrb[10].mxu1 %vm48_vm0, %v36_v25 }
  0xdf   :  { %v519_v27 = vpop.f32.mrb[0].mxu0 }
  0xe0   :  { %v525_v28 = vpop.f32.mrb[0].mxu1  ;;  %v145_v29 = vadd.f32 %v519_v27, %v446_v26  ;;  %v139_v31 = vpop.f32.mrb[1].mxu0 }
  0xe1   :  { %v165_v30 = vadd.f32 %v525_v28, %v446_v26  ;;  %v159_v32 = vpop.f32.mrb[1].mxu1  ;;  %v140_v33 = vadd.f32 %v446_v26, %v139_v31 }
  0xe2   :  { %v160_v34 = vadd.f32 %v446_v26, %v159_v32  ;;  %179 = vst.msk [vmem:[%s841_s7 + $0x8] sm:$0xff] %vm48_vm0, %v145_v29 }
  0xe3   :  { %183 = vst.msk [vmem:[%s841_s7 + $0x28] sm:$0xff] %vm48_vm0, %v165_v30  ;;  %178 = vst.msk [vmem:[%s841_s7] sm:$0xff] %vm48_vm0, %v140_v33  ;;  %v522_v35 = vpop.f32.mrb[2].mxu0 }
  0xe4   :  { %182 = vst.msk [vmem:[%s841_s7 + $0x20] sm:$0xff] %vm48_vm0, %v160_v34  ;;  %v528_v36 = vpop.f32.mrb[2].mxu1  ;;  %v155_v37 = vadd.f32 %v522_v35, %v446_v26  ;;  %v149_v39 = vpop.f32.mrb[3].mxu0 }
  0xe5   :  { %v175_v38 = vadd.f32 %v528_v36, %v446_v26  ;;  %v169_v40 = vpop.f32.mrb[3].mxu1  ;;  %v150_v41 = vadd.f32 %v446_v26, %v149_v39 }
  0xe6   :  { %v170_v42 = vadd.f32 %v446_v26, %v169_v40  ;;  %181 = vst.msk [vmem:[%s841_s7 + $0x18] sm:$0xff] %vm48_vm0, %v155_v37 }
  0xe7   :  { %185 = vst.msk [vmem:[%s841_s7 + $0x38] sm:$0xff] %vm48_vm0, %v175_v38  ;;  %180 = vst.msk [vmem:[%s841_s7 + $0x10] sm:$0xff] %vm48_vm0, %v150_v41  ;;  %v559_v46 = vpop.f32.mrb[4].mxu0 }
  0xe8   :  { %184 = vst.msk [vmem:[%s841_s7 + $0x30] sm:$0xff] %vm48_vm0, %v170_v42  ;;  %v539_v45 = vpop.f32.mrb[4].mxu1  ;;  %v393_v48 = vadd.f32 %v559_v46, %v464_v44  ;;  %v387_v50 = vpop.f32.mrb[5].mxu0 }
  0xe9   :  { %v269_v47 = vadd.f32 %v539_v45, %v455_v43  ;;  %v263_v49 = vpop.f32.mrb[5].mxu1  ;;  %v388_v52 = vadd.f32 %v464_v44, %v387_v50 }
  0xea   :  { %v264_v51 = vadd.f32 %v455_v43, %v263_v49  ;;  %427 = vst.msk [vmem:[%s845_s9 + $0x8] sm:$0xff] %vm48_vm0, %v393_v48 }
  0xeb   :  { %303 = vst.msk [vmem:[%s844_s8 + $0x8] sm:$0xff] %vm48_vm0, %v269_v47  ;;  %426 = vst.msk [vmem:[%s845_s9] sm:$0xff] %vm48_vm0, %v388_v52  ;;  %v562_v54 = vpop.f32.mrb[6].mxu0 }
  0xec   :  { %302 = vst.msk [vmem:[%s844_s8] sm:$0xff] %vm48_vm0, %v264_v51  ;;  %v542_v53 = vpop.f32.mrb[6].mxu1  ;;  %v403_v56 = vadd.f32 %v562_v54, %v464_v44  ;;  %v397_v58 = vpop.f32.mrb[7].mxu0 }
  0xed   :  { %v279_v55 = vadd.f32 %v542_v53, %v455_v43  ;;  %v273_v57 = vpop.f32.mrb[7].mxu1  ;;  %v398_v60 = vadd.f32 %v464_v44, %v397_v58 }
  0xee   :  { %v274_v59 = vadd.f32 %v455_v43, %v273_v57  ;;  %429 = vst.msk [vmem:[%s845_s9 + $0x18] sm:$0xff] %vm48_vm0, %v403_v56 }
  0xef   :  { %305 = vst.msk [vmem:[%s844_s8 + $0x18] sm:$0xff] %vm48_vm0, %v279_v55  ;;  %428 = vst.msk [vmem:[%s845_s9 + $0x10] sm:$0xff] %vm48_vm0, %v398_v60  ;;  %v565_v62 = vpop.f32.mrb[8].mxu0 }
  0xf0   :  { %304 = vst.msk [vmem:[%s844_s8 + $0x10] sm:$0xff] %vm48_vm0, %v274_v59  ;;  %v545_v61 = vpop.f32.mrb[8].mxu1  ;;  %v413_v0 = vadd.f32 %v565_v62, %v464_v44  ;;  %v407_v2 = vpop.f32.mrb[9].mxu0 }
  0xf1   :  { %v289_v63 = vadd.f32 %v545_v61, %v455_v43  ;;  %v283_v1 = vpop.f32.mrb[9].mxu1  ;;  %v408_v4 = vadd.f32 %v464_v44, %v407_v2 }
  0xf2   :  { %v284_v3 = vadd.f32 %v455_v43, %v283_v1  ;;  %431 = vst.msk [vmem:[%s845_s9 + $0x28] sm:$0xff] %vm48_vm0, %v413_v0 }
  0xf3   :  { %307 = vst.msk [vmem:[%s844_s8 + $0x28] sm:$0xff] %vm48_vm0, %v289_v63  ;;  %430 = vst.msk [vmem:[%s845_s9 + $0x20] sm:$0xff] %vm48_vm0, %v408_v4  ;;  %v568_v6 = vpop.f32.mrb[10].mxu0 }
  0xf4   :  { %306 = vst.msk [vmem:[%s844_s8 + $0x20] sm:$0xff] %vm48_vm0, %v284_v3  ;;  %v548_v5 = vpop.f32.mrb[10].mxu1  ;;  %v423_v8 = vadd.f32 %v568_v6, %v464_v44  ;;  %v417_v10 = vpop.f32.mrb[11].mxu0 }
  0xf5   :  { %v299_v7 = vadd.f32 %v548_v5, %v455_v43  ;;  %v293_v9 = vpop.f32.mrb[11].mxu1  ;;  %v418_v12 = vadd.f32 %v464_v44, %v417_v10 }
  0xf6   :  { %v294_v11 = vadd.f32 %v455_v43, %v293_v9  ;;  %433 = vst.msk [vmem:[%s845_s9 + $0x38] sm:$0xff] %vm48_vm0, %v423_v8 }
  0xf7   :  { %309 = vst.msk [vmem:[%s844_s8 + $0x38] sm:$0xff] %vm48_vm0, %v299_v7  ;;  %432 = vst.msk [vmem:[%s845_s9 + $0x30] sm:$0xff] %vm48_vm0, %v418_v12 }
  0xf8   :  { %308 = vst.msk [vmem:[%s844_s8 + $0x30] sm:$0xff] %vm48_vm0, %v294_v11 }

</bundles_post_ra>
